<compile_context>
chip_gen: v6e
topology: v6e:2x2x1
jax: 0.10.0
libtpu: 0.0.40
codegen_flags: <defaults>
</compile_context>

<pallas_src>
import functools

import jax
import jax.numpy as jnp
from jax.experimental import pallas as pl
from jax.experimental.pallas import tpu as pltpu


# ---------------------------------------------------------------------------
# Pallas kernel: one GCN layer's aggregation  out = A_hat @ XW + b  (+ ReLU)
# Tiled over (row blocks, k blocks); f32 VMEM accumulator over the k axis.
# ---------------------------------------------------------------------------
def _gcn_aggregate_kernel(a_ref, xw_ref, b_ref, out_ref, acc_ref, *, apply_relu):
    k = pl.program_id(1)

    @pl.when(k == 0)
    def _():
        acc_ref[...] = jnp.zeros_like(acc_ref)

    # bf16 x bf16 -> f32 accumulation on the MXU.
    acc_ref[...] += jnp.dot(a_ref[...], xw_ref[...],
                            preferred_element_type=jnp.float32)

    @pl.when(k == pl.num_programs(1) - 1)
    def _():
        res = acc_ref[...] + b_ref[...]
        if apply_relu:
            res = jnp.maximum(res, 0.0)
        out_ref[...] = res.astype(out_ref.dtype)


def _round_up(x, m):
    return ((x + m - 1) // m) * m


def _gcn_aggregate(a_pad, xw_pad, b_pad, *, apply_relu, tm, tk):
    """out[n_pad, h_pad] = A_pad @ XW_pad + b_pad (+ ReLU), tiled Pallas matmul."""
    n_pad = a_pad.shape[0]
    h_pad = xw_pad.shape[1]
    grid = (n_pad // tm, n_pad // tk)

    # Scheduler hints.
    flops = 2 * n_pad * n_pad * h_pad
    bytes_accessed = (n_pad * n_pad * 2                      # A (bf16), read once
                      + grid[0] * n_pad * h_pad * 2          # XW re-streamed per row block
                      + n_pad * h_pad * 4                    # output (f32)
                      + h_pad * 4)                           # bias

    # Per-step VMEM budget (double buffers + accumulator), generous 2x margin,
    # capped well below v7x's 64 MiB physical VMEM.
    vmem_bytes = (2 * tm * tk * 2          # A tiles (bf16, double buffered)
                  + 2 * tk * h_pad * 2     # XW tiles (bf16, double buffered)
                  + 2 * tm * h_pad * 4     # output tiles (f32, double buffered)
                  + tm * h_pad * 4         # f32 accumulator scratch
                  + 2 * h_pad * 4)         # bias
    vmem_limit = int(min(max(2 * vmem_bytes, 8 * 1024 * 1024), 48 * 1024 * 1024))

    kernel = functools.partial(_gcn_aggregate_kernel, apply_relu=apply_relu)

    return pl.pallas_call(
        kernel,
        out_shape=jax.ShapeDtypeStruct((n_pad, h_pad), jnp.float32),
        grid_spec=pltpu.PrefetchScalarGridSpec(
            num_scalar_prefetch=0,
            grid=grid,
            in_specs=[
                pl.BlockSpec((tm, tk), lambda i, k: (i, k)),       # A_hat tile
                pl.BlockSpec((tk, h_pad), lambda i, k: (k, 0)),    # XW tile
                pl.BlockSpec((1, h_pad), lambda i, k: (0, 0)),     # bias (constant)
            ],
            out_specs=pl.BlockSpec((tm, h_pad), lambda i, k: (i, 0)),
            scratch_shapes=[pltpu.VMEM((tm, h_pad), jnp.float32)],
        ),
        compiler_params=pltpu.CompilerParams(
            dimension_semantics=("parallel", "arbitrary"),
            vmem_limit_bytes=vmem_limit,
        ),
        cost_estimate=pl.CostEstimate(
            flops=int(flops), transcendentals=0, bytes_accessed=int(bytes_accessed)),
    )(a_pad, xw_pad, b_pad)


# ---------------------------------------------------------------------------
# Full 3-layer forward:  H1 = relu(A(XW1)+b1); H2 = relu(A(H1W2)+b2); Y = A(H2W3)+b3
# ---------------------------------------------------------------------------
@jax.jit
def structured_gcn_forward(a_hat, x, params):
    w1, b1, w2, b2, w3, b3 = params
    n = x.shape[0]
    hidden = w1.shape[1]
    out_dim = w3.shape[1]

    # Tile sizes: lane-aligned (multiple of 128); bigger tiles for bigger graphs.
    if n <= 256:
        tile = 128
    elif n <= 1024:
        tile = 256
    else:
        tile = 512
    n_pad = _round_up(n, tile)
    h_pad = _round_up(hidden, 128)
    o_pad = _round_up(out_dim, 128)

    # Zero-padding: extra A rows/cols are zero, extra channels are zero (zero W
    # cols / bias) so padded entries stay zero through every layer and are
    # sliced off at the end.
    a_pad = jnp.zeros((n_pad, n_pad), jnp.bfloat16).at[:n, :n].set(
        a_hat.astype(jnp.bfloat16))
    x_pad = jnp.zeros((n_pad, x.shape[1]), jnp.float32).at[:n, :].set(x)

    def pad_w(w, rows, cols):
        return jnp.zeros((rows, cols), jnp.float32).at[:w.shape[0], :w.shape[1]].set(w)

    def pad_b(b, cols):
        b = b.reshape(1, -1)
        return jnp.zeros((1, cols), jnp.float32).at[:, :b.shape[1]].set(b)

    w1p = pad_w(w1, x.shape[1], h_pad)
    w2p = pad_w(w2, h_pad, h_pad)
    w3p = pad_w(w3, h_pad, o_pad)
    b1p, b2p, b3p = pad_b(b1, h_pad), pad_b(b2, h_pad), pad_b(b3, o_pad)

    def xform(h, w):
        # Small feature-side matmul, hoisted out of the Pallas reduction loop.
        # bf16 inputs, f32 accumulation, bf16 result for the MXU aggregation.
        return jnp.dot(h.astype(jnp.bfloat16), w.astype(jnp.bfloat16),
                       preferred_element_type=jnp.float32).astype(jnp.bfloat16)

    # Layer 1 (+ReLU); dropout(training=False) -> identity.
    h1 = _gcn_aggregate(a_pad, xform(x_pad, w1p), b1p,
                        apply_relu=True, tm=tile, tk=tile)
    # Layer 2 (+ReLU); dropout(training=False) -> identity.
    h2 = _gcn_aggregate(a_pad, xform(h1, w2p), b2p,
                        apply_relu=True, tm=tile, tk=tile)
    # Layer 3 (no activation).
    y = _gcn_aggregate(a_pad, xform(h2, w3p), b3p,
                       apply_relu=False, tm=tile, tk=tile)
    # TODO(synk): for graphs where bf16 A_hat fits VMEM, fuse all three layers
    # in one kernel keeping A resident to avoid re-streaming it per layer.
    return y[:n, :out_dim]


# ---------------------------------------------------------------------------
# Glue (plain JAX): dense normalized adjacency, mirroring PyG gcn_norm
# (add self-loops, symmetric D^{-1/2} (A+I) D^{-1/2}).
# ---------------------------------------------------------------------------
def build_normalized_adjacency(edge_index, num_nodes):
    src = edge_index[0]
    dst = edge_index[1]
    loop = jnp.arange(num_nodes, dtype=edge_index.dtype)
    src = jnp.concatenate([src, loop])
    dst = jnp.concatenate([dst, loop])

    deg = jnp.zeros((num_nodes,), jnp.float32).at[dst].add(1.0)
    deg_inv_sqrt = jnp.where(deg > 0, 1.0 / jnp.sqrt(deg), 0.0)
    norm = deg_inv_sqrt[src] * deg_inv_sqrt[dst]

    # out[i] = sum over edges (j -> i) of norm * x[j]  =>  A_hat[i, j] = norm
    return jnp.zeros((num_nodes, num_nodes), jnp.float32).at[dst, src].add(norm)


def init_params(key, num_features, hidden_dim, output_dim):
    """Deterministic glorot-style init for the three GCNConv layers."""
    k1, k2, k3, kb1, kb2, kb3 = jax.random.split(key, 6)

    def glorot(k, fan_in, fan_out):
        limit = jnp.sqrt(6.0 / (fan_in + fan_out))
        return jax.random.uniform(k, (fan_in, fan_out), jnp.float32,
                                  minval=-limit, maxval=limit)

    w1 = glorot(k1, num_features, hidden_dim)
    b1 = 0.1 * jax.random.normal(kb1, (1, hidden_dim), jnp.float32)
    w2 = glorot(k2, hidden_dim, hidden_dim)
    b2 = 0.1 * jax.random.normal(kb2, (1, hidden_dim), jnp.float32)
    w3 = glorot(k3, hidden_dim, output_dim)
    b3 = 0.1 * jax.random.normal(kb3, (1, output_dim), jnp.float32)
    return (w1, b1, w2, b2, w3, b3)


# ---------------------------------------------------------------------------
# Pure-JAX reference with the same numerics (bf16 matmul inputs, f32 acc).
# ---------------------------------------------------------------------------
def reference_forward(a_hat, x, params):
    w1, b1, w2, b2, w3, b3 = params
    a = a_hat.astype(jnp.bfloat16)

    def layer(h, w, b, relu):
        xw = jnp.dot(h.astype(jnp.bfloat16), w.astype(jnp.bfloat16),
                     preferred_element_type=jnp.float32).astype(jnp.bfloat16)
        out = jnp.dot(a, xw, preferred_element_type=jnp.float32) + b
        return jnp.maximum(out, 0.0) if relu else out

    h = layer(x, w1, b1, True)
    h = layer(h, w2, b2, True)
    return layer(h, w3, b3, False)


if __name__ == "__main__":
    # Small, module-consistent shapes (module defaults hidden=64, output=32).
    num_nodes = 200
    num_features = 16
    hidden_dim = 64
    output_dim = 32
    num_edges = 800

    key = jax.random.PRNGKey(0)
    k_x, k_src, k_dst, k_w = jax.random.split(key, 4)

    x = jax.random.normal(k_x, (num_nodes, num_features), jnp.float32)
    src = jax.random.randint(k_src, (num_edges,), 0, num_nodes, jnp.int32)
    dst = jax.random.randint(k_dst, (num_edges,), 0, num_nodes, jnp.int32)
    edge_index = jnp.stack([src, dst], axis=0)                 # [2, E]

    params = init_params(k_w, num_features, hidden_dim, output_dim)
    a_hat = build_normalized_adjacency(edge_index, num_nodes)

    out = structured_gcn_forward(a_hat, x, params)
    out = jax.block_until_ready(out)

    ref = reference_forward(a_hat, x, params)
    assert out.shape == (num_nodes, output_dim)
    max_err = float(jnp.max(jnp.abs(out - ref)))
    assert jnp.allclose(out, ref, atol=1e-2, rtol=1e-2), f"mismatch vs reference: {max_err}"

    print("KERNEL_OK")
</pallas_src>

<mosaic_0001>
module attributes {stable_mosaic.version = 11 : i64} {
  func.func @_gcn_aggregate_kernel(%arg0: i32, %arg1: i32, %arg2: memref<128x128xbf16, #tpu.memory_space<vmem>>, %arg3: memref<128x128xbf16, #tpu.memory_space<vmem>>, %arg4: memref<1x128xf32, #tpu.memory_space<vmem>>, %arg5: memref<128x128xf32, #tpu.memory_space<vmem>>, %arg6: memref<128x128xf32, #tpu.memory_space<vmem>>) attributes {dimension_semantics = [#tpu.dimension_semantics<parallel>, #tpu.dimension_semantics<arbitrary>], iteration_bounds = array<i64: 2, 2>, scalar_prefetch = 0 : i64, scratch_operands = 1 : i64, tpu.core_type = #tpu.core_type<tc>, window_params = [{transform_indices = @transform_0, window_bounds = array<i64: 128, 128>}, {transform_indices = @transform_1, window_bounds = array<i64: 128, 128>}, {pipeline_mode = #tpu.pipeline_mode<synchronous>, transform_indices = @transform_2, window_bounds = array<i64: 1, 128>}, {transform_indices = @transform_3, window_bounds = array<i64: 128, 128>}]} {
    %c0_i32 = arith.constant 0 : i32
    %0 = arith.cmpi eq, %arg1, %c0_i32 : i32
    %1 = arith.extui %0 : i1 to i32
    %c0_i32_0 = arith.constant 0 : i32
    %2 = arith.cmpi ne, %1, %c0_i32_0 : i32
    scf.if %2 {
      %cst_9 = arith.constant 0.000000e+00 : f32
      %12 = vector.broadcast %cst_9 : f32 to vector<128x128xf32>
      %c0_10 = arith.constant 0 : index
      %c0_11 = arith.constant 0 : index
      %13 = vector.load %arg6[%c0_10, %c0_11] : memref<128x128xf32, #tpu.memory_space<vmem>>, vector<128x128xf32>
      tpu.vector_store %arg6[%c0_10, %c0_11], %12 {strides = array<i32>} : memref<128x128xf32, #tpu.memory_space<vmem>>, vector<128x128xf32>,
    } else {
    }
    %c0 = arith.constant 0 : index
    %c0_1 = arith.constant 0 : index
    %3 = vector.load %arg6[%c0, %c0_1] : memref<128x128xf32, #tpu.memory_space<vmem>>, vector<128x128xf32>
    %c0_2 = arith.constant 0 : index
    %c0_3 = arith.constant 0 : index
    %4 = vector.load %arg2[%c0_2, %c0_3] : memref<128x128xbf16, #tpu.memory_space<vmem>>, vector<128x128xbf16>
    %c0_4 = arith.constant 0 : index
    %c0_5 = arith.constant 0 : index
    %5 = vector.load %arg3[%c0_4, %c0_5] : memref<128x128xbf16, #tpu.memory_space<vmem>>, vector<128x128xbf16>
    %cst = arith.constant dense<0.000000e+00> : vector<128x128xf32>
    %6 = tpu.matmul %4, %5, %cst {dimension_numbers = #tpu.dot_dimension_numbers<[1], [0], [0], [1], [0, 0, 1, 1], [], []>} : vector<128x128xbf16>, vector<128x128xbf16>, vector<128x128xf32> -> vector<128x128xf32>
    %7 = arith.addf %3, %6 : vector<128x128xf32>
    %c0_6 = arith.constant 0 : index
    %c0_7 = arith.constant 0 : index
    %8 = vector.load %arg6[%c0_6, %c0_7] : memref<128x128xf32, #tpu.memory_space<vmem>>, vector<128x128xf32>
    tpu.vector_store %arg6[%c0_6, %c0_7], %7 {strides = array<i32>} : memref<128x128xf32, #tpu.memory_space<vmem>>, vector<128x128xf32>,
    %c1_i32 = arith.constant 1 : i32
    %9 = arith.cmpi eq, %arg1, %c1_i32 : i32
    %10 = arith.extui %9 : i1 to i32
    %c0_i32_8 = arith.constant 0 : i32
    %11 = arith.cmpi ne, %10, %c0_i32_8 : i32
    scf.if %11 {
      %c0_9 = arith.constant 0 : index
      %c0_10 = arith.constant 0 : index
      %12 = vector.load %arg6[%c0_9, %c0_10] : memref<128x128xf32, #tpu.memory_space<vmem>>, vector<128x128xf32>
      %c0_11 = arith.constant 0 : index
      %c0_12 = arith.constant 0 : index
      %13 = vector.load %arg4[%c0_11, %c0_12] : memref<1x128xf32, #tpu.memory_space<vmem>>, vector<1x128xf32>
      %14 = vector.broadcast %13 : vector<1x128xf32> to vector<128x128xf32>
      %15 = arith.addf %12, %14 : vector<128x128xf32>
      %cst_13 = arith.constant 0.000000e+00 : f32
      %16 = vector.broadcast %cst_13 : f32 to vector<128x128xf32>
      %17 = arith.maximumf %15, %16 : vector<128x128xf32>
      %c0_14 = arith.constant 0 : index
      %c0_15 = arith.constant 0 : index
      %18 = vector.load %arg5[%c0_14, %c0_15] : memref<128x128xf32, #tpu.memory_space<vmem>>, vector<128x128xf32>
      tpu.vector_store %arg5[%c0_14, %c0_15], %17 {strides = array<i32>} : memref<128x128xf32, #tpu.memory_space<vmem>>, vector<128x128xf32>,
    } else {
    }
    return
  }
  func.func @transform_0(%arg0: i32, %arg1: i32) -> (i32, i32) {
    %c0_i32 = arith.constant 0 : i32
    return %arg0, %arg1 : i32, i32
  }
  func.func @transform_1(%arg0: i32, %arg1: i32) -> (i32, i32) {
    %c0_i32 = arith.constant 0 : i32
    %c0_i32_0 = arith.constant 0 : i32
    return %arg1, %c0_i32 : i32, i32
  }
  func.func @transform_2(%arg0: i32, %arg1: i32) -> (i32, i32) {
    %c0_i32 = arith.constant 0 : i32
    %c0_i32_0 = arith.constant 0 : i32
    %c0_i32_1 = arith.constant 0 : i32
    return %c0_i32, %c0_i32_0 : i32, i32
  }
  func.func @transform_3(%arg0: i32, %arg1: i32) -> (i32, i32) {
    %c0_i32 = arith.constant 0 : i32
    %c0_i32_0 = arith.constant 0 : i32
    return %arg0, %c0_i32 : i32, i32
  }
}

module attributes {stable_mosaic.version = 11 : i64} {
  func.func @_gcn_aggregate_kernel(%arg0: i32, %arg1: i32, %arg2: memref<128x128xbf16, #tpu.memory_space<vmem>>, %arg3: memref<128x128xbf16, #tpu.memory_space<vmem>>, %arg4: memref<1x128xf32, #tpu.memory_space<vmem>>, %arg5: memref<128x128xf32, #tpu.memory_space<vmem>>, %arg6: memref<128x128xf32, #tpu.memory_space<vmem>>) attributes {dimension_semantics = [#tpu.dimension_semantics<parallel>, #tpu.dimension_semantics<arbitrary>], iteration_bounds = array<i64: 2, 2>, scalar_prefetch = 0 : i64, scratch_operands = 1 : i64, tpu.core_type = #tpu.core_type<tc>, window_params = [{transform_indices = @transform_0, window_bounds = array<i64: 128, 128>}, {transform_indices = @transform_1, window_bounds = array<i64: 128, 128>}, {pipeline_mode = #tpu.pipeline_mode<synchronous>, transform_indices = @transform_2, window_bounds = array<i64: 1, 128>}, {transform_indices = @transform_3, window_bounds = array<i64: 128, 128>}]} {
    %c0_i32 = arith.constant 0 : i32
    %0 = arith.cmpi eq, %arg1, %c0_i32 : i32
    %1 = arith.extui %0 : i1 to i32
    %c0_i32_0 = arith.constant 0 : i32
    %2 = arith.cmpi ne, %1, %c0_i32_0 : i32
    scf.if %2 {
      %cst_9 = arith.constant 0.000000e+00 : f32
      %12 = vector.broadcast %cst_9 : f32 to vector<128x128xf32>
      %c0_10 = arith.constant 0 : index
      %c0_11 = arith.constant 0 : index
      %13 = vector.load %arg6[%c0_10, %c0_11] : memref<128x128xf32, #tpu.memory_space<vmem>>, vector<128x128xf32>
      tpu.vector_store %arg6[%c0_10, %c0_11], %12 {strides = array<i32>} : memref<128x128xf32, #tpu.memory_space<vmem>>, vector<128x128xf32>,
    } else {
    }
    %c0 = arith.constant 0 : index
    %c0_1 = arith.constant 0 : index
    %3 = vector.load %arg6[%c0, %c0_1] : memref<128x128xf32, #tpu.memory_space<vmem>>, vector<128x128xf32>
    %c0_2 = arith.constant 0 : index
    %c0_3 = arith.constant 0 : index
    %4 = vector.load %arg2[%c0_2, %c0_3] : memref<128x128xbf16, #tpu.memory_space<vmem>>, vector<128x128xbf16>
    %c0_4 = arith.constant 0 : index
    %c0_5 = arith.constant 0 : index
    %5 = vector.load %arg3[%c0_4, %c0_5] : memref<128x128xbf16, #tpu.memory_space<vmem>>, vector<128x128xbf16>
    %cst = arith.constant dense<0.000000e+00> : vector<128x128xf32>
    %6 = tpu.matmul %4, %5, %cst {dimension_numbers = #tpu.dot_dimension_numbers<[1], [0], [0], [1], [0, 0, 1, 1], [], []>} : vector<128x128xbf16>, vector<128x128xbf16>, vector<128x128xf32> -> vector<128x128xf32>
    %7 = arith.addf %3, %6 : vector<128x128xf32>
    %c0_6 = arith.constant 0 : index
    %c0_7 = arith.constant 0 : index
    %8 = vector.load %arg6[%c0_6, %c0_7] : memref<128x128xf32, #tpu.memory_space<vmem>>, vector<128x128xf32>
    tpu.vector_store %arg6[%c0_6, %c0_7], %7 {strides = array<i32>} : memref<128x128xf32, #tpu.memory_space<vmem>>, vector<128x128xf32>,
    %c1_i32 = arith.constant 1 : i32
    %9 = arith.cmpi eq, %arg1, %c1_i32 : i32
    %10 = arith.extui %9 : i1 to i32
    %c0_i32_8 = arith.constant 0 : i32
    %11 = arith.cmpi ne, %10, %c0_i32_8 : i32
    scf.if %11 {
      %c0_9 = arith.constant 0 : index
      %c0_10 = arith.constant 0 : index
      %12 = vector.load %arg6[%c0_9, %c0_10] : memref<128x128xf32, #tpu.memory_space<vmem>>, vector<128x128xf32>
      %c0_11 = arith.constant 0 : index
      %c0_12 = arith.constant 0 : index
      %13 = vector.load %arg4[%c0_11, %c0_12] : memref<1x128xf32, #tpu.memory_space<vmem>>, vector<1x128xf32>
      %14 = vector.broadcast %13 : vector<1x128xf32> to vector<128x128xf32>
      %15 = arith.addf %12, %14 : vector<128x128xf32>
      %c0_13 = arith.constant 0 : index
      %c0_14 = arith.constant 0 : index
      %16 = vector.load %arg5[%c0_13, %c0_14] : memref<128x128xf32, #tpu.memory_space<vmem>>, vector<128x128xf32>
      tpu.vector_store %arg5[%c0_13, %c0_14], %15 {strides = array<i32>} : memref<128x128xf32, #tpu.memory_space<vmem>>, vector<128x128xf32>,
    } else {
    }
    return
  }
  func.func @transform_0(%arg0: i32, %arg1: i32) -> (i32, i32) {
    %c0_i32 = arith.constant 0 : i32
    return %arg0, %arg1 : i32, i32
  }
  func.func @transform_1(%arg0: i32, %arg1: i32) -> (i32, i32) {
    %c0_i32 = arith.constant 0 : i32
    %c0_i32_0 = arith.constant 0 : i32
    return %arg1, %c0_i32 : i32, i32
  }
  func.func @transform_2(%arg0: i32, %arg1: i32) -> (i32, i32) {
    %c0_i32 = arith.constant 0 : i32
    %c0_i32_0 = arith.constant 0 : i32
    %c0_i32_1 = arith.constant 0 : i32
    return %c0_i32, %c0_i32_0 : i32, i32
  }
  func.func @transform_3(%arg0: i32, %arg1: i32) -> (i32, i32) {
    %c0_i32 = arith.constant 0 : i32
    %c0_i32_0 = arith.constant 0 : i32
    return %arg0, %c0_i32 : i32, i32
  }
}

</mosaic_0001>

<bundles_post_ra>
// kernel: structured_gcn_forward.3
= control target key start
LH: loop header
LB: loop body
LE: loop exit
PB: predicated region body
PF: predicated region fallthrough
CT: control target
= control target key end

     0   :  { %s1022_s12 = smov 0   ;;  %s1024_s13 = smov 0   ;;  %s1175_s0 = inlined_call_operand.vmem [shape: bf16[256,256], index: 0, kind: input, shape index: {}]   ;;  %s1176_s1 = inlined_call_operand.vmem [shape: bf16[256,128], index: 1, kind: input, shape index: {}]   ;;  %s1177_s2 = inlined_call_operand.vmem [shape: f32[1,128], index: 2, kind: input, shape index: {}]   ;;  %s1178_s3 = inlined_call_operand.vmem [shape: f32[256,128], index: 3, kind: output, shape index: {}]  }
   0x1   :  { %s1026_s14 = smov 0   ;;  %s1028_s15 = smov 0  }
   0x2   :  { %s1030_s16 = smov 0   ;;  %s1032_s17 = smov 0  }
   0x3   :  { %s1034_s18 = smov 0  }
   0x4 LB: > { %s22_s19 = sadd.s32 1, %s991_s16  ;;  %s25_s20 = sadd.s32 1, %s995_s17  ;;  %s999_s18 = sphi %s1034_s18, %s13_s18   ;;  %s995_s17 = sphi %s1032_s17, %s1184_s17   ;;  %s991_s16 = sphi %s1030_s16, %s1183_s16   ;;  %s987_s15 = sphi %s1028_s15, %s1182_s15   ;;  %s983_s14 = sphi %s1026_s14, %s1181_s14   ;;  %s979_s13 = sphi %s1024_s13, %s1180_s13   ;;  %s975_s12 = sphi %s1022_s12, %s1179_s12  }
   0x5   : > { %p23_p0 = scmp.ge.s32.totalorder %s22_s19, 2  ;;  %p41_p1 = scmp.ne.s32.totalorder %s979_s13, %s975_s12 }
   0x6   : > { %p42_p2 = scmp.eq.s32.totalorder %s999_s18, 0  ;;  %s34_s24 = sadd.s32 1, %s979_s13 }
   0x7   : > { %s1186_s19 = smov (%p23_p0, %s22_s19), 0  ;;  %s1188_s20 = smov (!%p23_p0, %s25_s20), %s995_s17 }
   0x8   : > { %p43_p3 = por %p42_p2, %p41_p1  ;;  %p27_p4 = scmp.ge.s32.totalorder %s1188_s20, 2 }
   0x9   : > { %s30_s21 = ssub.s32 %s991_s16, %s1186_s19  ;;  %p775_p6 = scmp.ge.s32.totalorder %s999_s18, 4 }
   0xa   : > { %s1190_s20 = smov (%p27_p4, %s1188_s20), 0 }
   0xb   : > { %s29_s22 = ssub.s32 %s995_s17, %s1190_s20  ;;  %143 = sbr.rel (%p775_p6) target bundleno = 32 (0x20), region = 20 }
   0xc   : > { %s31_s23 = sor.u32 %s30_s21, %s29_s22 }
   0xd   : > { %p32_p5 = scmp.eq.s32.totalorder %s31_s23, 0 }
   0xf   : > { %s1073_s25 = scalar_select %p32_p5, %s979_s13, %s34_s24  }
  0x10   : > { %146 = sbr.rel (!%p43_p3) target bundleno = 32 (0x20), region = 24  ;;  %s148_s26 = sand.u32 (%p43_p3), 1, %s979_s13  }
  0x11   : > { %s807_s27 = sshll.u32 (%p43_p3), %s995_s17, 5  ;;  %s776_s28 = sshll.u32 (%p43_p3), %s148_s26, 6 }
  0x12   : > { %s153_s29 = sadd.s32 (%p43_p3), %s991_s16, %s807_s27  ;;  %s150_s7 = scalar_lea.vmem (%p43_p3), [#allocation3], %s776_s28 }
  0x13   : > { %s779_s30 = sshll.u32 (%p43_p3), %s153_s29, 2 }
  0x14   : > { %s1082_s6 = scalar_lea.vmem (%p43_p3), %s1175_s0, %s779_s30 }
  0x15   : > { %v172_v0 = vld [vmem:[%s1082_s6] sm:$0xf]  ;;  %v174_v1 = vld [vmem:[%s1082_s6 + $0x8] sm:$0xf]  ;;  %v176_v2 = vld [vmem:[%s1082_s6 + $0x10] sm:$0xf] }
  0x16   : > { %173 = vst [vmem:[%s150_s7] sm:$0xf] %v172_v0  ;;  %175 = vst [vmem:[%s150_s7 + $0x4] sm:$0xf] %v174_v1  ;;  %v178_v3 = vld [vmem:[%s1082_s6 + $0x18] sm:$0xf] }
  0x17   : > { %177 = vst [vmem:[%s150_s7 + $0x8] sm:$0xf] %v176_v2  ;;  %v180_v4 = vld [vmem:[%s1082_s6 + $0x20] sm:$0xf]  ;;  %v182_v5 = vld [vmem:[%s1082_s6 + $0x28] sm:$0xf] }
  0x18   : > { %179 = vst [vmem:[%s150_s7 + $0xc] sm:$0xf] %v178_v3  ;;  %181 = vst [vmem:[%s150_s7 + $0x10] sm:$0xf] %v180_v4  ;;  %v184_v6 = vld [vmem:[%s1082_s6 + $0x30] sm:$0xf] }
  0x19   : > { %183 = vst [vmem:[%s150_s7 + $0x14] sm:$0xf] %v182_v5  ;;  %v186_v7 = vld [vmem:[%s1082_s6 + $0x38] sm:$0xf]  ;;  %v188_v8 = vld [vmem:[%s1082_s6 + $0x40] sm:$0xf] }
  0x1a   : > { %185 = vst [vmem:[%s150_s7 + $0x18] sm:$0xf] %v184_v6  ;;  %187 = vst [vmem:[%s150_s7 + $0x1c] sm:$0xf] %v186_v7  ;;  %v190_v9 = vld [vmem:[%s1082_s6 + $0x48] sm:$0xf] }
  0x1b   : > { %189 = vst [vmem:[%s150_s7 + $0x20] sm:$0xf] %v188_v8  ;;  %v192_v10 = vld [vmem:[%s1082_s6 + $0x50] sm:$0xf]  ;;  %v194_v11 = vld [vmem:[%s1082_s6 + $0x58] sm:$0xf] }
  0x1c   : > { %191 = vst [vmem:[%s150_s7 + $0x24] sm:$0xf] %v190_v9  ;;  %193 = vst [vmem:[%s150_s7 + $0x28] sm:$0xf] %v192_v10  ;;  %v196_v12 = vld [vmem:[%s1082_s6 + $0x60] sm:$0xf] }
  0x1d   : > { %195 = vst [vmem:[%s150_s7 + $0x2c] sm:$0xf] %v194_v11  ;;  %v198_v13 = vld [vmem:[%s1082_s6 + $0x68] sm:$0xf]  ;;  %v200_v14 = vld [vmem:[%s1082_s6 + $0x70] sm:$0xf] }
  0x1e   : > { %197 = vst [vmem:[%s150_s7 + $0x30] sm:$0xf] %v196_v12  ;;  %199 = vst [vmem:[%s150_s7 + $0x34] sm:$0xf] %v198_v13  ;;  %v202_v15 = vld [vmem:[%s1082_s6 + $0x78] sm:$0xf] }
  0x1f   : > { %201 = vst [vmem:[%s150_s7 + $0x38] sm:$0xf] %v200_v14  ;;  %203 = vst [vmem:[%s150_s7 + $0x3c] sm:$0xf] %v202_v15 }
  0x20 PF: > { %p780_p7 = scmp.ge.s32.totalorder %s999_s18, 1  ;;  %p267_p8 = scmp.lt.s32.totalorder %s999_s18, 5 }
  0x22   : > { %p268_p9 = pnand %p780_p7, %p267_p8 }
  0x23   : > { %s274_s8 = sand.u32 (!%p268_p9), 1, %s975_s12   ;;  %s782_s9 = sshll.u32 (!%p268_p9), %s983_s14, 4 }
  0x24   : > { %271 = sbr.rel (%p268_p9) target bundleno = 314 (0x13a), region = 69  ;;  %s781_s10 = sshll.u32 (!%p268_p9), %s274_s8, 6 }
  0x25   : > { %p304_p10 = scmp.lt.s32.totalorder (!%p268_p9), %s782_s9, 31  ;;  %s784_s11 = sshll.u32 (!%p268_p9), %s987_s15, 4 }
  0x26   : > { %p310_p11 = scmp.lt.s32.totalorder (!%p268_p9), %s784_s11, 31  ;;  %s1115_s12 = scalar_lea.vmem (!%p268_p9), [#allocation3], %s781_s10 }
  0x27   : > { %p786_p12 = scmp.ne.s32.totalorder (!%p268_p9), %s983_s14, 0 }
  0x29   : > { %s1192_s9 = smov (!%p304_p10, %s782_s9), 31  ;;  %s1194_s11 = smov (!%p310_p11, %s784_s11), 31 }
  0x2a   : > { %s783_s21 = sshll.u32 %s1192_s9, 2  ;;  %s785_s26 = sshll.u32 %s1194_s11, 3 }
  0x2b   : > { %s1108_s24 = scalar_lea.vmem %s1176_s1, %s783_s21  ;;  %s1113_s29 = scalar_lea.vmem %s1178_s3, %s785_s26 }
  0x2c   : > { %319 = sbr.rel (%p786_p12) target bundleno = 58 (0x3a), region = 77 }
  0x31   : > { %v1001_v16 = vmov 0.0  }
  0x32   : > { %320 = vst [vmem:[#allocation2 + $0x30] sm:$0xff] %v1001_v16  ;;  %321 = vst [vmem:[#allocation2] sm:$0xff] %v1001_v16 }
  0x33   : > { %322 = vst [vmem:[#allocation2 + $0x58] sm:$0xff] %v1001_v16  ;;  %323 = vst [vmem:[#allocation2 + $0x18] sm:$0xff] %v1001_v16 }
  0x34   : > { %324 = vst [vmem:[#allocation2 + $0x50] sm:$0xff] %v1001_v16  ;;  %325 = vst [vmem:[#allocation2 + $0x68] sm:$0xff] %v1001_v16 }
  0x35   : > { %326 = vst [vmem:[#allocation2 + $0x8] sm:$0xff] %v1001_v16  ;;  %327 = vst [vmem:[#allocation2 + $0x48] sm:$0xff] %v1001_v16 }
  0x36   : > { %328 = vst [vmem:[#allocation2 + $0x40] sm:$0xff] %v1001_v16  ;;  %329 = vst [vmem:[#allocation2 + $0x20] sm:$0xff] %v1001_v16 }
  0x37   : > { %330 = vst [vmem:[#allocation2 + $0x10] sm:$0xff] %v1001_v16  ;;  %331 = vst [vmem:[#allocation2 + $0x38] sm:$0xff] %v1001_v16 }
  0x38   : > { %332 = vst [vmem:[#allocation2 + $0x60] sm:$0xff] %v1001_v16  ;;  %333 = vst [vmem:[#allocation2 + $0x70] sm:$0xff] %v1001_v16 }
  0x39   : > { %334 = vst [vmem:[#allocation2 + $0x78] sm:$0xff] %v1001_v16  ;;  %335 = vst [vmem:[#allocation2 + $0x28] sm:$0xff] %v1001_v16 }
  0x3a PF: > { %v929_v17 = vld [vmem:[%s1108_s24 + $0x38] sm:$0xff]   ;;  %v930_v18 = vld [vmem:[%s1108_s24 + $0x30] sm:$0xff]   ;;  %v931_v19 = vld [vmem:[%s1108_s24 + $0x28] sm:$0xff]   ;;  %p803_p13 = scmp.ne.s32.totalorder %s983_s14, 1 }
  0x3b   : > { %824 = vmatprep.subr.bf16.mxu0 %v929_v17  ;;  %856 = vmatprep.subr.bf16.mxu1 %v929_v17  ;;  %v932_v20 = vld [vmem:[%s1108_s24 + $0x20] sm:$0xff]   ;;  %v933_v23 = vld [vmem:[%s1108_s24 + $0x18] sm:$0xff]   ;;  %v934_v24 = vld [vmem:[%s1108_s24 + $0x10] sm:$0xff]  }
  0x3c   : > { %825 = vmatpush3.bf16.msra.mxu0 %v929_v17  ;;  %864 = vmatpush3.bf16.msra.mxu1 %v929_v17  ;;  %v937_v21 = vld [vmem:[%s1115_s12] sm:$0xff]   ;;  %v935_v25 = vld [vmem:[%s1108_s24 + $0x8] sm:$0xff]   ;;  %v941_v29 = vld [vmem:[%s1115_s12 + $0x10] sm:$0xff]  }
  0x3d   : > { %826 = vmatprep.subr.bf16.mxu0 %v930_v18  ;;  %857 = vmatprep.subr.bf16.mxu1 %v930_v18  ;;  %v938_v22 = vld [vmem:[%s1115_s12 + $0x20] sm:$0xff]   ;;  %v939_v27 = vld [vmem:[%s1115_s12 + $0x8] sm:$0xff]   ;;  %v942_v30 = vld [vmem:[%s1115_s12 + $0x30] sm:$0xff]  }
  0x3e   : > { %840 = vmatprep.mubr.bf16.mxu0 %v937_v21  ;;  %848 = vmatprep.mubr.bf16.mxu1 %v938_v22  ;;  %v936_v26 = vld [vmem:[%s1108_s24] sm:$0xff]   ;;  %v940_v28 = vld [vmem:[%s1115_s12 + $0x28] sm:$0xff]   ;;  %v943_v31 = vld [vmem:[%s1115_s12 + $0x18] sm:$0xff]  }
  0x3f   : > { %v944_v32 = vld [vmem:[%s1115_s12 + $0x38] sm:$0xff]   ;;  %v346_v34 = vld [vmem:[#allocation2 + $0x10] sm:$0xff]  ;;  %v344_v38 = vld [vmem:[#allocation2 + $0x40] sm:$0xff] }
  0x40   : > { %827 = vmatpush3.bf16.msra.mxu0 %v930_v18  ;;  %865 = vmatpush3.bf16.msra.mxu1 %v930_v18  ;;  %v338_v33 = vld [vmem:[#allocation2 + $0x58] sm:$0xff]  ;;  %v336_v37 = vld [vmem:[#allocation2 + $0x30] sm:$0xff]  ;;  %v337_v49 = vld [vmem:[#allocation2] sm:$0xff] }
  0x41   : > { %828 = vmatprep.subr.bf16.mxu0 %v931_v19  ;;  %858 = vmatprep.subr.bf16.mxu1 %v931_v19  ;;  %v339_v43 = vld [vmem:[#allocation2 + $0x18] sm:$0xff]  ;;  %v345_v50 = vld [vmem:[#allocation2 + $0x20] sm:$0xff]  ;;  %v342_v55 = vld [vmem:[#allocation2 + $0x8] sm:$0xff] }
  0x42   : > { %v347_v44 = vld [vmem:[#allocation2 + $0x38] sm:$0xff]  ;;  %v340_v61 = vld [vmem:[#allocation2 + $0x50] sm:$0xff]  ;;  %v348_v62 = vld [vmem:[#allocation2 + $0x60] sm:$0xff] }
  0x43   : > { %v350_v56 = vld [vmem:[#allocation2 + $0x78] sm:$0xff]  ;;  %v343_v3 = vld [vmem:[#allocation2 + $0x48] sm:$0xff]  ;;  %v349_v10 = vld [vmem:[#allocation2 + $0x70] sm:$0xff] }
  0x44   : > { %829 = vmatpush3.bf16.msra.mxu0 %v931_v19  ;;  %866 = vmatpush3.bf16.msra.mxu1 %v931_v19  ;;  %v351_v4 = vld [vmem:[#allocation2 + $0x28] sm:$0xff] }
  0x45   : > { %830 = vmatprep.subr.bf16.mxu0 %v932_v20  ;;  %859 = vmatprep.subr.bf16.mxu1 %v932_v20  ;;  %v341_v9 = vld [vmem:[#allocation2 + $0x68] sm:$0xff] }
  0x48   : > { %831 = vmatpush3.bf16.msra.mxu0 %v932_v20  ;;  %867 = vmatpush3.bf16.msra.mxu1 %v932_v20 }
  0x49   : > { %832 = vmatprep.subr.bf16.mxu0 %v933_v23  ;;  %860 = vmatprep.subr.bf16.mxu1 %v933_v23 }
  0x4c   : > { %833 = vmatpush3.bf16.msra.mxu0 %v933_v23  ;;  %868 = vmatpush3.bf16.msra.mxu1 %v933_v23 }
  0x4d   : > { %834 = vmatprep.subr.bf16.mxu0 %v934_v24  ;;  %861 = vmatprep.subr.bf16.mxu1 %v934_v24 }
  0x50   : > { %835 = vmatpush3.bf16.msra.mxu0 %v934_v24  ;;  %869 = vmatpush3.bf16.msra.mxu1 %v934_v24 }
  0x51   : > { %836 = vmatprep.subr.bf16.mxu0 %v935_v25  ;;  %862 = vmatprep.subr.bf16.mxu1 %v935_v25 }
  0x54   : > { %837 = vmatpush3.bf16.msra.mxu0 %v935_v25  ;;  %870 = vmatpush3.bf16.msra.mxu1 %v935_v25 }
  0x55   : > { %838 = vmatprep.subr.bf16.mxu0 %v936_v26  ;;  %863 = vmatprep.subr.bf16.mxu1 %v936_v26 }
  0x58   : > { %839 = vmatpush3.bf16.msra.mxu0 %v936_v26  ;;  %871 = vmatpush3.bf16.msra.mxu1 %v936_v26 }
  0x5b   : > { %841 = vmatmul.mubr.bf16.vlgmr.msra.gmra.mxu0 %v939_v27  ;;  %849 = vmatmul.mubr.bf16.vlgmr.msra.gmra.mxu1 %v940_v28 }
  0x5c   : > { %844 = vmatprep.mubr.bf16.mxu0 %v941_v29  ;;  %852 = vmatprep.mubr.bf16.mxu1 %v942_v30 }
  0x63   : > { %845 = vmatmul.mubr.bf16.gmra.mxu0 %v943_v31  ;;  %853 = vmatmul.mubr.bf16.gmra.mxu1 %v944_v32 }
 0x11b   : > { %v842_v35 = vpop.f32.mrf.mxu0  ;;  %v850_v36 = vpop.f32.mrf.mxu1 }
 0x11c   : > { %v579_v39 = vadd.f32 %v842_v35, %v338_v33  ;;  %v587_v40 = vadd.f32 %v850_v36, %v346_v34 }
 0x11d   : > { %v514_v41 = vpop.f32.mrf.mxu0  ;;  %v546_v42 = vpop.f32.mrf.mxu1 }
 0x11e   : > { %595 = vst [vmem:[#allocation2 + $0x58] sm:$0xff] %v579_v39  ;;  %603 = vst [vmem:[#allocation2 + $0x10] sm:$0xff] %v587_v40  ;;  %v577_v45 = vadd.f32 %v514_v41, %v336_v37  ;;  %v585_v46 = vadd.f32 %v546_v42, %v344_v38 }
 0x11f   : > { %v843_v47 = vpop.f32.mrf.mxu0  ;;  %v851_v48 = vpop.f32.mrf.mxu1 }
 0x120   : > { %593 = vst [vmem:[#allocation2 + $0x30] sm:$0xff] %v577_v45  ;;  %601 = vst [vmem:[#allocation2 + $0x40] sm:$0xff] %v585_v46  ;;  %v580_v51 = vadd.f32 %v843_v47, %v339_v43  ;;  %v588_v52 = vadd.f32 %v851_v48, %v347_v44 }
 0x121   : > { %v517_v53 = vpop.f32.mrf.mxu0  ;;  %v549_v54 = vpop.f32.mrf.mxu1 }
 0x122   : > { %596 = vst [vmem:[#allocation2 + $0x18] sm:$0xff] %v580_v51  ;;  %604 = vst [vmem:[#allocation2 + $0x38] sm:$0xff] %v588_v52  ;;  %v578_v57 = vadd.f32 %v517_v53, %v337_v49  ;;  %v586_v58 = vadd.f32 %v549_v54, %v345_v50 }
 0x123   : > { %v846_v59 = vpop.f32.mrf.mxu0  ;;  %v854_v60 = vpop.f32.mrf.mxu1 }
 0x124   : > { %594 = vst [vmem:[#allocation2] sm:$0xff] %v578_v57  ;;  %602 = vst [vmem:[#allocation2 + $0x20] sm:$0xff] %v586_v58  ;;  %v583_v63 = vadd.f32 %v846_v59, %v342_v55  ;;  %v591_v0 = vadd.f32 %v854_v60, %v350_v56 }
 0x125   : > { %v530_v1 = vpop.f32.mrf.mxu0  ;;  %v562_v2 = vpop.f32.mrf.mxu1 }
 0x126   : > { %599 = vst [vmem:[#allocation2 + $0x8] sm:$0xff] %v583_v63  ;;  %607 = vst [vmem:[#allocation2 + $0x78] sm:$0xff] %v591_v0  ;;  %v581_v5 = vadd.f32 %v530_v1, %v340_v61  ;;  %v589_v6 = vadd.f32 %v562_v2, %v348_v62 }
 0x127   : > { %v847_v7 = vpop.f32.mrf.mxu0  ;;  %v855_v8 = vpop.f32.mrf.mxu1 }
 0x128   : > { %597 = vst [vmem:[#allocation2 + $0x50] sm:$0xff] %v581_v5  ;;  %605 = vst [vmem:[#allocation2 + $0x60] sm:$0xff] %v589_v6  ;;  %v584_v11 = vadd.f32 %v847_v7, %v343_v3  ;;  %v592_v12 = vadd.f32 %v855_v8, %v351_v4  ;;  %612 = sbr.rel (%p803_p13) target bundleno = 314 (0x13a), region = 81 }
 0x129   : > { %v533_v13 = vpop.f32.mrf.mxu0  ;;  %v565_v14 = vpop.f32.mrf.mxu1 }
 0x12a   : > { %600 = vst [vmem:[#allocation2 + $0x48] sm:$0xff] %v584_v11  ;;  %608 = vst [vmem:[#allocation2 + $0x28] sm:$0xff] %v592_v12  ;;  %v582_v15 = vadd.f32 %v533_v13, %v341_v9  ;;  %v590_v16 = vadd.f32 %v565_v14, %v349_v10 }
 0x12c   : > { %598 = vst [vmem:[#allocation2 + $0x68] sm:$0xff] %v582_v15  ;;  %606 = vst [vmem:[#allocation2 + $0x70] sm:$0xff] %v590_v16 }
 0x12d   : > { %v613_v17 = vld [vmem:[#allocation2 + $0x30] sm:$0xff]  ;;  %v804_v18 = vld [vmem:[%s1177_s2] ss:$0 sm:$0xff]  ;;  %v615_v22 = vld [vmem:[#allocation2 + $0x58] sm:$0xff] }
 0x12e   : > { %v614_v19 = vld [vmem:[#allocation2] sm:$0xff]  ;;  %v636_v20 = vadd.f32 %v804_v18, %v613_v17  ;;  %v616_v23 = vld [vmem:[#allocation2 + $0x18] sm:$0xff]  ;;  %v638_v25 = vadd.f32 %v804_v18, %v615_v22  ;;  %v619_v29 = vld [vmem:[#allocation2 + $0x8] sm:$0xff] }
 0x12f   : > { %v637_v21 = vadd.f32 %v804_v18, %v614_v19  ;;  %v617_v24 = vld [vmem:[#allocation2 + $0x50] sm:$0xff]  ;;  %v639_v26 = vadd.f32 %v804_v18, %v616_v23  ;;  %v642_v34 = vadd.f32 %v804_v18, %v619_v29  ;;  %v621_v35 = vld [vmem:[#allocation2 + $0x40] sm:$0xff]  ;;  %v624_v42 = vld [vmem:[#allocation2 + $0x38] sm:$0xff] }
 0x130   : > { %v640_v27 = vadd.f32 %v804_v18, %v617_v24  ;;  %v652_v31 = vmax.f32 %v636_v20, 0.0  ;;  %v622_v36 = vld [vmem:[#allocation2 + $0x20] sm:$0xff]  ;;  %v623_v37 = vld [vmem:[#allocation2 + $0x10] sm:$0xff]  ;;  %v654_v38 = vmax.f32 %v638_v25, 0.0  ;;  %v644_v47 = vadd.f32 %v804_v18, %v621_v35  ;;  %v627_v49 = vld [vmem:[#allocation2 + $0x78] sm:$0xff] }
 0x131   : > { %v620_v30 = vld [vmem:[#allocation2 + $0x48] sm:$0xff]  ;;  %v653_v32 = vmax.f32 %v637_v21, 0.0  ;;  %v655_v39 = vmax.f32 %v639_v26, 0.0  ;;  %v625_v43 = vld [vmem:[#allocation2 + $0x60] sm:$0xff]  ;;  %v658_v46 = vmax.f32 %v642_v34, 0.0  ;;  %v645_v48 = vadd.f32 %v804_v18, %v622_v36 }
 0x132   : > { %v656_v40 = vmax.f32 %v640_v27, 0.0  ;;  %v643_v41 = vadd.f32 %v804_v18, %v620_v30  ;;  %668 = vst [vmem:[%s1113_s29] sm:$0xff] %v652_v31  ;;  %v628_v50 = vld [vmem:[#allocation2 + $0x28] sm:$0xff]  ;;  %670 = vst [vmem:[%s1113_s29 + $0x10] sm:$0xff] %v654_v38  ;;  %v646_v52 = vadd.f32 %v804_v18, %v623_v37  ;;  %v647_v53 = vadd.f32 %v804_v18, %v624_v42 }
 0x133   : > { %v618_v28 = vld [vmem:[#allocation2 + $0x68] sm:$0xff]  ;;  %v626_v44 = vld [vmem:[#allocation2 + $0x70] sm:$0xff]  ;;  %669 = vst [vmem:[%s1113_s29 + $0x8] sm:$0xff] %v653_v32  ;;  %671 = vst [vmem:[%s1113_s29 + $0x18] sm:$0xff] %v655_v39  ;;  %v648_v54 = vadd.f32 %v804_v18, %v625_v43  ;;  %v660_v55 = vmax.f32 %v644_v47, 0.0  ;;  %v661_v56 = vmax.f32 %v645_v48, 0.0  ;;  %v650_v58 = vadd.f32 %v804_v18, %v627_v49 }
 0x134   : > { %v641_v33 = vadd.f32 %v804_v18, %v618_v28  ;;  %672 = vst [vmem:[%s1113_s29 + $0x20] sm:$0xff] %v656_v40  ;;  %v659_v51 = vmax.f32 %v643_v41, 0.0  ;;  %674 = vst [vmem:[%s1113_s29 + $0x30] sm:$0xff] %v658_v46  ;;  %v649_v57 = vadd.f32 %v804_v18, %v626_v44  ;;  %v662_v59 = vmax.f32 %v646_v52, 0.0 }
 0x135   : > { %v663_v60 = vmax.f32 %v647_v53, 0.0  ;;  %v664_v61 = vmax.f32 %v648_v54, 0.0  ;;  %v651_v62 = vadd.f32 %v804_v18, %v628_v50  ;;  %676 = vst [vmem:[%s1113_s29 + $0x40] sm:$0xff] %v660_v55  ;;  %677 = vst [vmem:[%s1113_s29 + $0x48] sm:$0xff] %v661_v56  ;;  %v666_v0 = vmax.f32 %v650_v58, 0.0 }
 0x136   : > { %v657_v45 = vmax.f32 %v641_v33, 0.0  ;;  %675 = vst [vmem:[%s1113_s29 + $0x38] sm:$0xff] %v659_v51  ;;  %v665_v63 = vmax.f32 %v649_v57, 0.0  ;;  %678 = vst [vmem:[%s1113_s29 + $0x50] sm:$0xff] %v662_v59 }
 0x137   : > { %679 = vst [vmem:[%s1113_s29 + $0x58] sm:$0xff] %v663_v60  ;;  %680 = vst [vmem:[%s1113_s29 + $0x60] sm:$0xff] %v664_v61  ;;  %v667_v1 = vmax.f32 %v651_v62, 0.0 }
 0x138   : > { %673 = vst [vmem:[%s1113_s29 + $0x28] sm:$0xff] %v657_v45  ;;  %681 = vst [vmem:[%s1113_s29 + $0x68] sm:$0xff] %v665_v63 }
 0x139   : > { %682 = vst [vmem:[%s1113_s29 + $0x70] sm:$0xff] %v666_v0  ;;  %683 = vst [vmem:[%s1113_s29 + $0x78] sm:$0xff] %v667_v1 }
 0x13a PF: > { %s13_s18 = sadd.s32 1, %s999_s18   ;;  %s1179_s12 = smov %s979_s13 }
 0x13b   : > { %p10_p0 = scmp.ge.s32.totalorder %s13_s18, 6   ;;  %s1180_s13 = smov %s1073_s25 }
 0x13c   : > { %s1181_s14 = smov %s991_s16  ;;  %s1182_s15 = smov %s995_s17 }
 0x13d   : > { %s1183_s16 = smov %s1186_s19  ;;  %s1184_s17 = smov %s1190_s20 }
 0x13e   :  { %12 = sbr.rel (!%p10_p0) target bundleno = 4 (0x4), region = 119 }

// kernel: structured_gcn_forward.5
= control target key start
LH: loop header
LB: loop body
LE: loop exit
PB: predicated region body
PF: predicated region fallthrough
CT: control target
= control target key end

     0   :  { %s1006_s12 = smov 0   ;;  %s1008_s13 = smov 0   ;;  %s1159_s0 = inlined_call_operand.vmem [shape: bf16[256,256], index: 0, kind: input, shape index: {}]   ;;  %s1160_s1 = inlined_call_operand.vmem [shape: bf16[256,128], index: 1, kind: input, shape index: {}]   ;;  %s1161_s2 = inlined_call_operand.vmem [shape: f32[1,128], index: 2, kind: input, shape index: {}]   ;;  %s1162_s3 = inlined_call_operand.vmem [shape: f32[256,128], index: 3, kind: output, shape index: {}]  }
   0x1   :  { %s1010_s14 = smov 0   ;;  %s1012_s15 = smov 0  }
   0x2   :  { %s1014_s16 = smov 0   ;;  %s1016_s17 = smov 0  }
   0x3   :  { %s1018_s18 = smov 0  }
   0x4 LB: > { %s22_s19 = sadd.s32 1, %s975_s16  ;;  %s25_s20 = sadd.s32 1, %s979_s17  ;;  %s983_s18 = sphi %s1018_s18, %s13_s18   ;;  %s979_s17 = sphi %s1016_s17, %s1168_s17   ;;  %s975_s16 = sphi %s1014_s16, %s1167_s16   ;;  %s971_s15 = sphi %s1012_s15, %s1166_s15   ;;  %s967_s14 = sphi %s1010_s14, %s1165_s14   ;;  %s963_s13 = sphi %s1008_s13, %s1164_s13   ;;  %s959_s12 = sphi %s1006_s12, %s1163_s12  }
   0x5   : > { %p23_p0 = scmp.ge.s32.totalorder %s22_s19, 2  ;;  %p41_p1 = scmp.ne.s32.totalorder %s963_s13, %s959_s12 }
   0x6   : > { %p42_p2 = scmp.eq.s32.totalorder %s983_s18, 0  ;;  %s34_s24 = sadd.s32 1, %s963_s13 }
   0x7   : > { %s1170_s19 = smov (%p23_p0, %s22_s19), 0  ;;  %s1172_s20 = smov (!%p23_p0, %s25_s20), %s979_s17 }
   0x8   : > { %p43_p3 = por %p42_p2, %p41_p1  ;;  %p27_p4 = scmp.ge.s32.totalorder %s1172_s20, 2 }
   0x9   : > { %s30_s21 = ssub.s32 %s975_s16, %s1170_s19  ;;  %p759_p6 = scmp.ge.s32.totalorder %s983_s18, 4 }
   0xa   : > { %s1174_s20 = smov (%p27_p4, %s1172_s20), 0 }
   0xb   : > { %s29_s22 = ssub.s32 %s979_s17, %s1174_s20  ;;  %143 = sbr.rel (%p759_p6) target bundleno = 32 (0x20), region = 20 }
   0xc   : > { %s31_s23 = sor.u32 %s30_s21, %s29_s22 }
   0xd   : > { %p32_p5 = scmp.eq.s32.totalorder %s31_s23, 0 }
   0xf   : > { %s1057_s25 = scalar_select %p32_p5, %s963_s13, %s34_s24  }
  0x10   : > { %146 = sbr.rel (!%p43_p3) target bundleno = 32 (0x20), region = 24  ;;  %s148_s26 = sand.u32 (%p43_p3), 1, %s963_s13  }
  0x11   : > { %s791_s27 = sshll.u32 (%p43_p3), %s979_s17, 5  ;;  %s760_s28 = sshll.u32 (%p43_p3), %s148_s26, 6 }
  0x12   : > { %s153_s29 = sadd.s32 (%p43_p3), %s975_s16, %s791_s27  ;;  %s150_s7 = scalar_lea.vmem (%p43_p3), [#allocation3], %s760_s28 }
  0x13   : > { %s763_s30 = sshll.u32 (%p43_p3), %s153_s29, 2 }
  0x14   : > { %s1066_s6 = scalar_lea.vmem (%p43_p3), %s1159_s0, %s763_s30 }
  0x15   : > { %v172_v0 = vld [vmem:[%s1066_s6] sm:$0xf]  ;;  %v174_v1 = vld [vmem:[%s1066_s6 + $0x8] sm:$0xf]  ;;  %v176_v2 = vld [vmem:[%s1066_s6 + $0x10] sm:$0xf] }
  0x16   : > { %173 = vst [vmem:[%s150_s7] sm:$0xf] %v172_v0  ;;  %175 = vst [vmem:[%s150_s7 + $0x4] sm:$0xf] %v174_v1  ;;  %v178_v3 = vld [vmem:[%s1066_s6 + $0x18] sm:$0xf] }
  0x17   : > { %177 = vst [vmem:[%s150_s7 + $0x8] sm:$0xf] %v176_v2  ;;  %v180_v4 = vld [vmem:[%s1066_s6 + $0x20] sm:$0xf]  ;;  %v182_v5 = vld [vmem:[%s1066_s6 + $0x28] sm:$0xf] }
  0x18   : > { %179 = vst [vmem:[%s150_s7 + $0xc] sm:$0xf] %v178_v3  ;;  %181 = vst [vmem:[%s150_s7 + $0x10] sm:$0xf] %v180_v4  ;;  %v184_v6 = vld [vmem:[%s1066_s6 + $0x30] sm:$0xf] }
  0x19   : > { %183 = vst [vmem:[%s150_s7 + $0x14] sm:$0xf] %v182_v5  ;;  %v186_v7 = vld [vmem:[%s1066_s6 + $0x38] sm:$0xf]  ;;  %v188_v8 = vld [vmem:[%s1066_s6 + $0x40] sm:$0xf] }
  0x1a   : > { %185 = vst [vmem:[%s150_s7 + $0x18] sm:$0xf] %v184_v6  ;;  %187 = vst [vmem:[%s150_s7 + $0x1c] sm:$0xf] %v186_v7  ;;  %v190_v9 = vld [vmem:[%s1066_s6 + $0x48] sm:$0xf] }
  0x1b   : > { %189 = vst [vmem:[%s150_s7 + $0x20] sm:$0xf] %v188_v8  ;;  %v192_v10 = vld [vmem:[%s1066_s6 + $0x50] sm:$0xf]  ;;  %v194_v11 = vld [vmem:[%s1066_s6 + $0x58] sm:$0xf] }
  0x1c   : > { %191 = vst [vmem:[%s150_s7 + $0x24] sm:$0xf] %v190_v9  ;;  %193 = vst [vmem:[%s150_s7 + $0x28] sm:$0xf] %v192_v10  ;;  %v196_v12 = vld [vmem:[%s1066_s6 + $0x60] sm:$0xf] }
  0x1d   : > { %195 = vst [vmem:[%s150_s7 + $0x2c] sm:$0xf] %v194_v11  ;;  %v198_v13 = vld [vmem:[%s1066_s6 + $0x68] sm:$0xf]  ;;  %v200_v14 = vld [vmem:[%s1066_s6 + $0x70] sm:$0xf] }
  0x1e   : > { %197 = vst [vmem:[%s150_s7 + $0x30] sm:$0xf] %v196_v12  ;;  %199 = vst [vmem:[%s150_s7 + $0x34] sm:$0xf] %v198_v13  ;;  %v202_v15 = vld [vmem:[%s1066_s6 + $0x78] sm:$0xf] }
  0x1f   : > { %201 = vst [vmem:[%s150_s7 + $0x38] sm:$0xf] %v200_v14  ;;  %203 = vst [vmem:[%s150_s7 + $0x3c] sm:$0xf] %v202_v15 }
  0x20 PF: > { %p764_p7 = scmp.ge.s32.totalorder %s983_s18, 1  ;;  %p267_p8 = scmp.lt.s32.totalorder %s983_s18, 5 }
  0x22   : > { %p268_p9 = pnand %p764_p7, %p267_p8 }
  0x23   : > { %s274_s8 = sand.u32 (!%p268_p9), 1, %s959_s12   ;;  %s766_s9 = sshll.u32 (!%p268_p9), %s967_s14, 4 }
  0x24   : > { %271 = sbr.rel (%p268_p9) target bundleno = 312 (0x138), region = 69  ;;  %s765_s10 = sshll.u32 (!%p268_p9), %s274_s8, 6 }
  0x25   : > { %p304_p10 = scmp.lt.s32.totalorder (!%p268_p9), %s766_s9, 31  ;;  %s768_s11 = sshll.u32 (!%p268_p9), %s971_s15, 4 }
  0x26   : > { %p310_p11 = scmp.lt.s32.totalorder (!%p268_p9), %s768_s11, 31  ;;  %s1099_s12 = scalar_lea.vmem (!%p268_p9), [#allocation3], %s765_s10 }
  0x27   : > { %p770_p12 = scmp.ne.s32.totalorder (!%p268_p9), %s967_s14, 0 }
  0x29   : > { %s1176_s9 = smov (!%p304_p10, %s766_s9), 31  ;;  %s1178_s11 = smov (!%p310_p11, %s768_s11), 31 }
  0x2a   : > { %s767_s21 = sshll.u32 %s1176_s9, 2  ;;  %s769_s26 = sshll.u32 %s1178_s11, 3 }
  0x2b   : > { %s1092_s24 = scalar_lea.vmem %s1160_s1, %s767_s21  ;;  %s1097_s29 = scalar_lea.vmem %s1162_s3, %s769_s26 }
  0x2c   : > { %319 = sbr.rel (%p770_p12) target bundleno = 58 (0x3a), region = 77 }
  0x31   : > { %v985_v16 = vmov 0.0  }
  0x32   : > { %320 = vst [vmem:[#allocation2 + $0x30] sm:$0xff] %v985_v16  ;;  %321 = vst [vmem:[#allocation2] sm:$0xff] %v985_v16 }
  0x33   : > { %322 = vst [vmem:[#allocation2 + $0x58] sm:$0xff] %v985_v16  ;;  %323 = vst [vmem:[#allocation2 + $0x18] sm:$0xff] %v985_v16 }
  0x34   : > { %324 = vst [vmem:[#allocation2 + $0x50] sm:$0xff] %v985_v16  ;;  %325 = vst [vmem:[#allocation2 + $0x68] sm:$0xff] %v985_v16 }
  0x35   : > { %326 = vst [vmem:[#allocation2 + $0x8] sm:$0xff] %v985_v16  ;;  %327 = vst [vmem:[#allocation2 + $0x48] sm:$0xff] %v985_v16 }
  0x36   : > { %328 = vst [vmem:[#allocation2 + $0x40] sm:$0xff] %v985_v16  ;;  %329 = vst [vmem:[#allocation2 + $0x20] sm:$0xff] %v985_v16 }
  0x37   : > { %330 = vst [vmem:[#allocation2 + $0x10] sm:$0xff] %v985_v16  ;;  %331 = vst [vmem:[#allocation2 + $0x38] sm:$0xff] %v985_v16 }
  0x38   : > { %332 = vst [vmem:[#allocation2 + $0x60] sm:$0xff] %v985_v16  ;;  %333 = vst [vmem:[#allocation2 + $0x70] sm:$0xff] %v985_v16 }
  0x39   : > { %334 = vst [vmem:[#allocation2 + $0x78] sm:$0xff] %v985_v16  ;;  %335 = vst [vmem:[#allocation2 + $0x28] sm:$0xff] %v985_v16 }
  0x3a PF: > { %v913_v17 = vld [vmem:[%s1092_s24 + $0x38] sm:$0xff]   ;;  %v914_v18 = vld [vmem:[%s1092_s24 + $0x30] sm:$0xff]   ;;  %v915_v19 = vld [vmem:[%s1092_s24 + $0x28] sm:$0xff]   ;;  %p787_p13 = scmp.ne.s32.totalorder %s967_s14, 1 }
  0x3b   : > { %808 = vmatprep.subr.bf16.mxu0 %v913_v17  ;;  %840 = vmatprep.subr.bf16.mxu1 %v913_v17  ;;  %v916_v20 = vld [vmem:[%s1092_s24 + $0x20] sm:$0xff]   ;;  %v917_v23 = vld [vmem:[%s1092_s24 + $0x18] sm:$0xff]   ;;  %v918_v24 = vld [vmem:[%s1092_s24 + $0x10] sm:$0xff]  }
  0x3c   : > { %809 = vmatpush3.bf16.msra.mxu0 %v913_v17  ;;  %848 = vmatpush3.bf16.msra.mxu1 %v913_v17  ;;  %v921_v21 = vld [vmem:[%s1099_s12] sm:$0xff]   ;;  %v919_v25 = vld [vmem:[%s1092_s24 + $0x8] sm:$0xff]   ;;  %v925_v29 = vld [vmem:[%s1099_s12 + $0x10] sm:$0xff]  }
  0x3d   : > { %810 = vmatprep.subr.bf16.mxu0 %v914_v18  ;;  %841 = vmatprep.subr.bf16.mxu1 %v914_v18  ;;  %v922_v22 = vld [vmem:[%s1099_s12 + $0x20] sm:$0xff]   ;;  %v923_v27 = vld [vmem:[%s1099_s12 + $0x8] sm:$0xff]   ;;  %v926_v30 = vld [vmem:[%s1099_s12 + $0x30] sm:$0xff]  }
  0x3e   : > { %824 = vmatprep.mubr.bf16.mxu0 %v921_v21  ;;  %832 = vmatprep.mubr.bf16.mxu1 %v922_v22  ;;  %v920_v26 = vld [vmem:[%s1092_s24] sm:$0xff]   ;;  %v924_v28 = vld [vmem:[%s1099_s12 + $0x28] sm:$0xff]   ;;  %v927_v31 = vld [vmem:[%s1099_s12 + $0x18] sm:$0xff]  }
  0x3f   : > { %v928_v32 = vld [vmem:[%s1099_s12 + $0x38] sm:$0xff]   ;;  %v346_v34 = vld [vmem:[#allocation2 + $0x10] sm:$0xff]  ;;  %v344_v38 = vld [vmem:[#allocation2 + $0x40] sm:$0xff] }
  0x40   : > { %811 = vmatpush3.bf16.msra.mxu0 %v914_v18  ;;  %849 = vmatpush3.bf16.msra.mxu1 %v914_v18  ;;  %v338_v33 = vld [vmem:[#allocation2 + $0x58] sm:$0xff]  ;;  %v336_v37 = vld [vmem:[#allocation2 + $0x30] sm:$0xff]  ;;  %v337_v49 = vld [vmem:[#allocation2] sm:$0xff] }
  0x41   : > { %812 = vmatprep.subr.bf16.mxu0 %v915_v19  ;;  %842 = vmatprep.subr.bf16.mxu1 %v915_v19  ;;  %v339_v43 = vld [vmem:[#allocation2 + $0x18] sm:$0xff]  ;;  %v345_v50 = vld [vmem:[#allocation2 + $0x20] sm:$0xff]  ;;  %v342_v55 = vld [vmem:[#allocation2 + $0x8] sm:$0xff] }
  0x42   : > { %v347_v44 = vld [vmem:[#allocation2 + $0x38] sm:$0xff]  ;;  %v340_v61 = vld [vmem:[#allocation2 + $0x50] sm:$0xff]  ;;  %v348_v62 = vld [vmem:[#allocation2 + $0x60] sm:$0xff] }
  0x43   : > { %v350_v56 = vld [vmem:[#allocation2 + $0x78] sm:$0xff]  ;;  %v343_v3 = vld [vmem:[#allocation2 + $0x48] sm:$0xff]  ;;  %v349_v10 = vld [vmem:[#allocation2 + $0x70] sm:$0xff] }
  0x44   : > { %813 = vmatpush3.bf16.msra.mxu0 %v915_v19  ;;  %850 = vmatpush3.bf16.msra.mxu1 %v915_v19  ;;  %v351_v4 = vld [vmem:[#allocation2 + $0x28] sm:$0xff] }
  0x45   : > { %814 = vmatprep.subr.bf16.mxu0 %v916_v20  ;;  %843 = vmatprep.subr.bf16.mxu1 %v916_v20  ;;  %v341_v9 = vld [vmem:[#allocation2 + $0x68] sm:$0xff] }
  0x48   : > { %815 = vmatpush3.bf16.msra.mxu0 %v916_v20  ;;  %851 = vmatpush3.bf16.msra.mxu1 %v916_v20 }
  0x49   : > { %816 = vmatprep.subr.bf16.mxu0 %v917_v23  ;;  %844 = vmatprep.subr.bf16.mxu1 %v917_v23 }
  0x4c   : > { %817 = vmatpush3.bf16.msra.mxu0 %v917_v23  ;;  %852 = vmatpush3.bf16.msra.mxu1 %v917_v23 }
  0x4d   : > { %818 = vmatprep.subr.bf16.mxu0 %v918_v24  ;;  %845 = vmatprep.subr.bf16.mxu1 %v918_v24 }
  0x50   : > { %819 = vmatpush3.bf16.msra.mxu0 %v918_v24  ;;  %853 = vmatpush3.bf16.msra.mxu1 %v918_v24 }
  0x51   : > { %820 = vmatprep.subr.bf16.mxu0 %v919_v25  ;;  %846 = vmatprep.subr.bf16.mxu1 %v919_v25 }
  0x54   : > { %821 = vmatpush3.bf16.msra.mxu0 %v919_v25  ;;  %854 = vmatpush3.bf16.msra.mxu1 %v919_v25 }
  0x55   : > { %822 = vmatprep.subr.bf16.mxu0 %v920_v26  ;;  %847 = vmatprep.subr.bf16.mxu1 %v920_v26 }
  0x58   : > { %823 = vmatpush3.bf16.msra.mxu0 %v920_v26  ;;  %855 = vmatpush3.bf16.msra.mxu1 %v920_v26 }
  0x5b   : > { %825 = vmatmul.mubr.bf16.vlgmr.msra.gmra.mxu0 %v923_v27  ;;  %833 = vmatmul.mubr.bf16.vlgmr.msra.gmra.mxu1 %v924_v28 }
  0x5c   : > { %828 = vmatprep.mubr.bf16.mxu0 %v925_v29  ;;  %836 = vmatprep.mubr.bf16.mxu1 %v926_v30 }
  0x63   : > { %829 = vmatmul.mubr.bf16.gmra.mxu0 %v927_v31  ;;  %837 = vmatmul.mubr.bf16.gmra.mxu1 %v928_v32 }
 0x11b   : > { %v826_v35 = vpop.f32.mrf.mxu0  ;;  %v834_v36 = vpop.f32.mrf.mxu1 }
 0x11c   : > { %v579_v39 = vadd.f32 %v826_v35, %v338_v33  ;;  %v587_v40 = vadd.f32 %v834_v36, %v346_v34 }
 0x11d   : > { %v514_v41 = vpop.f32.mrf.mxu0  ;;  %v546_v42 = vpop.f32.mrf.mxu1 }
 0x11e   : > { %595 = vst [vmem:[#allocation2 + $0x58] sm:$0xff] %v579_v39  ;;  %603 = vst [vmem:[#allocation2 + $0x10] sm:$0xff] %v587_v40  ;;  %v577_v45 = vadd.f32 %v514_v41, %v336_v37  ;;  %v585_v46 = vadd.f32 %v546_v42, %v344_v38 }
 0x11f   : > { %v827_v47 = vpop.f32.mrf.mxu0  ;;  %v835_v48 = vpop.f32.mrf.mxu1 }
 0x120   : > { %593 = vst [vmem:[#allocation2 + $0x30] sm:$0xff] %v577_v45  ;;  %601 = vst [vmem:[#allocation2 + $0x40] sm:$0xff] %v585_v46  ;;  %v580_v51 = vadd.f32 %v827_v47, %v339_v43  ;;  %v588_v52 = vadd.f32 %v835_v48, %v347_v44 }
 0x121   : > { %v517_v53 = vpop.f32.mrf.mxu0  ;;  %v549_v54 = vpop.f32.mrf.mxu1 }
 0x122   : > { %596 = vst [vmem:[#allocation2 + $0x18] sm:$0xff] %v580_v51  ;;  %604 = vst [vmem:[#allocation2 + $0x38] sm:$0xff] %v588_v52  ;;  %v578_v57 = vadd.f32 %v517_v53, %v337_v49  ;;  %v586_v58 = vadd.f32 %v549_v54, %v345_v50 }
 0x123   : > { %v830_v59 = vpop.f32.mrf.mxu0  ;;  %v838_v60 = vpop.f32.mrf.mxu1 }
 0x124   : > { %594 = vst [vmem:[#allocation2] sm:$0xff] %v578_v57  ;;  %602 = vst [vmem:[#allocation2 + $0x20] sm:$0xff] %v586_v58  ;;  %v583_v63 = vadd.f32 %v830_v59, %v342_v55  ;;  %v591_v0 = vadd.f32 %v838_v60, %v350_v56 }
 0x125   : > { %v530_v1 = vpop.f32.mrf.mxu0  ;;  %v562_v2 = vpop.f32.mrf.mxu1 }
 0x126   : > { %599 = vst [vmem:[#allocation2 + $0x8] sm:$0xff] %v583_v63  ;;  %607 = vst [vmem:[#allocation2 + $0x78] sm:$0xff] %v591_v0  ;;  %v581_v5 = vadd.f32 %v530_v1, %v340_v61  ;;  %v589_v6 = vadd.f32 %v562_v2, %v348_v62 }
 0x127   : > { %v831_v7 = vpop.f32.mrf.mxu0  ;;  %v839_v8 = vpop.f32.mrf.mxu1 }
 0x128   : > { %597 = vst [vmem:[#allocation2 + $0x50] sm:$0xff] %v581_v5  ;;  %605 = vst [vmem:[#allocation2 + $0x60] sm:$0xff] %v589_v6  ;;  %v584_v11 = vadd.f32 %v831_v7, %v343_v3  ;;  %v592_v12 = vadd.f32 %v839_v8, %v351_v4  ;;  %612 = sbr.rel (%p787_p13) target bundleno = 312 (0x138), region = 81 }
 0x129   : > { %v533_v13 = vpop.f32.mrf.mxu0  ;;  %v565_v14 = vpop.f32.mrf.mxu1 }
 0x12a   : > { %600 = vst [vmem:[#allocation2 + $0x48] sm:$0xff] %v584_v11  ;;  %608 = vst [vmem:[#allocation2 + $0x28] sm:$0xff] %v592_v12  ;;  %v582_v15 = vadd.f32 %v533_v13, %v341_v9  ;;  %v590_v16 = vadd.f32 %v565_v14, %v349_v10 }
 0x12c   : > { %598 = vst [vmem:[#allocation2 + $0x68] sm:$0xff] %v582_v15  ;;  %606 = vst [vmem:[#allocation2 + $0x70] sm:$0xff] %v590_v16 }
 0x12d   : > { %v613_v17 = vld [vmem:[#allocation2 + $0x30] sm:$0xff]  ;;  %v788_v18 = vld [vmem:[%s1161_s2] ss:$0 sm:$0xff]  ;;  %v615_v22 = vld [vmem:[#allocation2 + $0x58] sm:$0xff] }
 0x12e   : > { %v614_v19 = vld [vmem:[#allocation2] sm:$0xff]  ;;  %v636_v20 = vadd.f32 %v788_v18, %v613_v17  ;;  %v616_v23 = vld [vmem:[#allocation2 + $0x18] sm:$0xff]  ;;  %v638_v25 = vadd.f32 %v788_v18, %v615_v22  ;;  %v619_v29 = vld [vmem:[#allocation2 + $0x8] sm:$0xff] }
 0x12f   : > { %v637_v21 = vadd.f32 %v788_v18, %v614_v19  ;;  %v617_v24 = vld [vmem:[#allocation2 + $0x50] sm:$0xff]  ;;  %v639_v26 = vadd.f32 %v788_v18, %v616_v23  ;;  %v642_v32 = vadd.f32 %v788_v18, %v619_v29  ;;  %v621_v34 = vld [vmem:[#allocation2 + $0x40] sm:$0xff]  ;;  %v624_v40 = vld [vmem:[#allocation2 + $0x38] sm:$0xff] }
 0x130   : > { %v640_v27 = vadd.f32 %v788_v18, %v617_v24  ;;  %652 = vst [vmem:[%s1097_s29] sm:$0xff] %v636_v20  ;;  %v622_v35 = vld [vmem:[#allocation2 + $0x20] sm:$0xff]  ;;  %v623_v36 = vld [vmem:[#allocation2 + $0x10] sm:$0xff]  ;;  %654 = vst [vmem:[%s1097_s29 + $0x10] sm:$0xff] %v638_v25  ;;  %v644_v37 = vadd.f32 %v788_v18, %v621_v34  ;;  %v647_v43 = vadd.f32 %v788_v18, %v624_v40 }
 0x131   : > { %v620_v30 = vld [vmem:[#allocation2 + $0x48] sm:$0xff]  ;;  %653 = vst [vmem:[%s1097_s29 + $0x8] sm:$0xff] %v637_v21  ;;  %655 = vst [vmem:[%s1097_s29 + $0x18] sm:$0xff] %v639_v26  ;;  %v645_v38 = vadd.f32 %v788_v18, %v622_v35  ;;  %v646_v39 = vadd.f32 %v788_v18, %v623_v36  ;;  %v625_v41 = vld [vmem:[#allocation2 + $0x60] sm:$0xff] }
 0x132   : > { %v643_v33 = vadd.f32 %v788_v18, %v620_v30  ;;  %656 = vst [vmem:[%s1097_s29 + $0x20] sm:$0xff] %v640_v27  ;;  %658 = vst [vmem:[%s1097_s29 + $0x30] sm:$0xff] %v642_v32  ;;  %v648_v44 = vadd.f32 %v788_v18, %v625_v41  ;;  %v627_v46 = vld [vmem:[#allocation2 + $0x78] sm:$0xff]  ;;  %v628_v47 = vld [vmem:[#allocation2 + $0x28] sm:$0xff] }
 0x133   : > { %v618_v28 = vld [vmem:[#allocation2 + $0x68] sm:$0xff]  ;;  %v626_v42 = vld [vmem:[#allocation2 + $0x70] sm:$0xff]  ;;  %660 = vst [vmem:[%s1097_s29 + $0x40] sm:$0xff] %v644_v37  ;;  %661 = vst [vmem:[%s1097_s29 + $0x48] sm:$0xff] %v645_v38  ;;  %v650_v48 = vadd.f32 %v788_v18, %v627_v46  ;;  %v651_v49 = vadd.f32 %v788_v18, %v628_v47 }
 0x134   : > { %v641_v31 = vadd.f32 %v788_v18, %v618_v28  ;;  %659 = vst [vmem:[%s1097_s29 + $0x38] sm:$0xff] %v643_v33  ;;  %v649_v45 = vadd.f32 %v788_v18, %v626_v42  ;;  %662 = vst [vmem:[%s1097_s29 + $0x50] sm:$0xff] %v646_v39 }
 0x135   : > { %663 = vst [vmem:[%s1097_s29 + $0x58] sm:$0xff] %v647_v43  ;;  %664 = vst [vmem:[%s1097_s29 + $0x60] sm:$0xff] %v648_v44 }
 0x136   : > { %657 = vst [vmem:[%s1097_s29 + $0x28] sm:$0xff] %v641_v31  ;;  %665 = vst [vmem:[%s1097_s29 + $0x68] sm:$0xff] %v649_v45 }
 0x137   : > { %666 = vst [vmem:[%s1097_s29 + $0x70] sm:$0xff] %v650_v48  ;;  %667 = vst [vmem:[%s1097_s29 + $0x78] sm:$0xff] %v651_v49 }
 0x138 PF: > { %s13_s18 = sadd.s32 1, %s983_s18   ;;  %s1163_s12 = smov %s963_s13 }
 0x139   : > { %p10_p0 = scmp.ge.s32.totalorder %s13_s18, 6   ;;  %s1164_s13 = smov %s1057_s25 }
 0x13a   : > { %s1165_s14 = smov %s975_s16  ;;  %s1166_s15 = smov %s979_s17 }
 0x13b   : > { %s1167_s16 = smov %s1170_s19  ;;  %s1168_s17 = smov %s1174_s20 }
 0x13c   :  { %12 = sbr.rel (!%p10_p0) target bundleno = 4 (0x4), region = 119 }

</bundles_post_ra>
